<compile_context>
chip_gen: v5e
topology: v5e:2x2
jax: 0.10.0
libtpu: 0.0.40
codegen_flags: <defaults>
</compile_context>

<pallas_src>
import functools

import jax
import jax.numpy as jnp
from jax.experimental import pallas as pl
from jax.experimental.pallas import tpu as pltpu

_SUBLANE = 8    # f32 sublane granule
_LANE = 128     # lane width


def _round_up(n, m):
    return ((n + m - 1) // m) * m


def _mlp_kernel(xT_ref, w1_ref, b1_ref, w2_ref, b2_ref, w3_ref, b3_ref, o_ref,
                *, tanh_dtype):
    f32 = jnp.float32
    xT = xT_ref[...]                                    # (2, Bt) f32
    w1 = w1_ref[...]                                    # (Hp, 2) f32

    # Layer 1: K=2 contraction as a VPU broadcast-FMA (skip the MXU).
    z1 = w1[:, 0:1] * xT[0:1, :] + w1[:, 1:2] * xT[1:2, :] + b1_ref[...]   # (Hp, Bt)
    h1 = jnp.tanh(z1.astype(tanh_dtype)).astype(f32)

    # Layer 2: the only real matmul -> MXU, f32 operands and f32 accumulation
    # (weights are resident, so narrowing them would save nothing and cost VPU packs).
    z2 = jnp.dot(w2_ref[...], h1, preferred_element_type=f32) + b2_ref[...]  # (Hp, Bt)
    h2 = jnp.tanh(z2.astype(tanh_dtype)).astype(f32)

    # Layer 3: N=1 output as elementwise scale + sublane reduce (VPU + XLU, no MXU).
    out = jnp.sum(w3_ref[...] * h2, axis=0, keepdims=True) + b3_ref[...]     # (1, Bt)

    o_ref[...] = out.astype(o_ref.dtype)                # lane-dense (1, Bt) store


def prepare_params(params):
    """One-time padding/transposition of PyTorch-layout weights (hoisted out of the
    per-call path).  Hidden dim padded only to the sublane granule (8 for f32)."""
    w1, b1, w2, b2, w3, b3 = params     # w1:(H,2) b1:(H,) w2:(H,H) b2:(H,) w3:(1,H) b3:(1,)
    H = w1.shape[0]
    Hp = _round_up(H, _SUBLANE)
    f32 = jnp.float32
    w1p = jnp.zeros((Hp, 2), f32).at[:H, :].set(w1.astype(f32))
    b1p = jnp.zeros((Hp, 1), f32).at[:H, 0].set(b1.astype(f32))
    w2p = jnp.zeros((Hp, Hp), f32).at[:H, :H].set(w2.astype(f32))
    b2p = jnp.zeros((Hp, 1), f32).at[:H, 0].set(b2.astype(f32))
    w3p = jnp.zeros((Hp, 1), f32).at[:H, 0].set(w3[0, :].astype(f32))
    b3p = b3.reshape(1, 1).astype(f32)
    # Zero padding is exact: padded hidden rows stay tanh(0)=0 everywhere and their
    # layer-3 weights are 0, so they contribute nothing to the real outputs.
    return (w1p, b1p, w2p, b2p, w3p, b3p)


@functools.partial(jax.jit, static_argnames=("block_b", "bf16_tanh"))
def simple_mlp_forward(x, prepped, *, block_b=2048, bf16_tanh=False):
    """x: (B, 2) float32; prepped: output of prepare_params. Returns (B,) float32."""
    assert block_b % _LANE == 0
    w1p, b1p, w2p, b2p, w3p, b3p = prepped
    Hp = w1p.shape[0]
    B = x.shape[0]
    f32 = jnp.float32

    # Lane-dense batch tile.  block_b ~2048 amortizes per-grid-step overhead; on v7x
    # (64 MiB VMEM, 2 TCs) callers should pick block_b so n_tiles is even and >= 2.
    Bt = min(block_b, _round_up(B, _LANE))
    Bp = _round_up(B, Bt)
    n_tiles = Bp // Bt

    # Transposed, zero-padded x (batch on the lane axis); fused under this jit with
    # the pallas_call so it is not a separate per-call launch cascade.
    xT = jnp.zeros((2, Bp), f32).at[:, :B].set(x.T.astype(f32))

    def const(shape):
        return pl.BlockSpec(shape, lambda i: (0,) * len(shape))

    kernel = functools.partial(
        _mlp_kernel, tanh_dtype=jnp.bfloat16 if bf16_tanh else jnp.float32)

    flops = 2 * Bp * (2 * Hp + Hp * Hp + Hp)
    bytes_accessed = (xT.size + Bp
                      + w1p.size + b1p.size + w2p.size + b2p.size
                      + w3p.size + 1) * 4

    out = pl.pallas_call(
        kernel,
        out_shape=jax.ShapeDtypeStruct((1, Bp), f32),
        grid=(n_tiles,),
        in_specs=[
            pl.BlockSpec((2, Bt), lambda i: (0, i)),     # x tiles, pipelined
            const((Hp, 2)), const((Hp, 1)),              # weights resident (const block)
            const((Hp, Hp)), const((Hp, 1)),
            const((Hp, 1)), const((1, 1)),
        ],
        out_specs=pl.BlockSpec((1, Bt), lambda i: (0, i)),
        compiler_params=pltpu.CompilerParams(
            dimension_semantics=("parallel",)),
        cost_estimate=pl.CostEstimate(
            flops=flops, transcendentals=2 * Bp * Hp,
            bytes_accessed=bytes_accessed),
    )(xT, w1p, b1p, w2p, b2p, w3p, b3p)

    # .squeeze(-1) from the PyTorch forward + drop batch padding (wrapper glue).
    return out[0, :B]


def init_params(key, hidden_size=64):
    """PyTorch nn.Linear default init; weights kept in torch layout (out, in)."""
    def linear(k, fan_in, fan_out):
        kw, kb = jax.random.split(k)
        bound = 1.0 / (float(fan_in) ** 0.5)
        w = jax.random.uniform(kw, (fan_out, fan_in), jnp.float32, -bound, bound)
        b = jax.random.uniform(kb, (fan_out,), jnp.float32, -bound, bound)
        return w, b

    k1, k2, k3 = jax.random.split(key, 3)
    w1, b1 = linear(k1, 2, hidden_size)
    w2, b2 = linear(k2, hidden_size, hidden_size)
    w3, b3 = linear(k3, hidden_size, 1)
    return (w1, b1, w2, b2, w3, b3)


def mlp_reference(x, params):
    w1, b1, w2, b2, w3, b3 = params
    h1 = jnp.tanh(x @ w1.T + b1)
    h2 = jnp.tanh(h1 @ w2.T + b2)
    return (h2 @ w3.T + b3)[:, 0]


if __name__ == "__main__":
    key = jax.random.PRNGKey(0)
    k_params, k_params2, k_x, k_x2 = jax.random.split(key, 4)

    # Small shapes: hidden=32, batch=8.
    hidden_size = 32
    params = init_params(k_params, hidden_size=hidden_size)
    prepped = prepare_params(params)
    x = jax.random.normal(k_x, (8, 2), jnp.float32)

    # Single tile, default block_b.
    y = simple_mlp_forward(x, prepped)
    jax.block_until_ready(y)
    ref = mlp_reference(x, params)
    assert y.shape == (8,)
    assert jnp.allclose(y, ref, atol=1e-5, rtol=1e-5)

    # Larger batch with a smaller tile: exercises the multi-tile 'parallel' grid
    # (2 tiles -> both TCs on v7x) and batch padding.
    x_big = jax.random.normal(k_x2, (1000, 2), jnp.float32)
    y_big = simple_mlp_forward(x_big, prepped, block_b=512)
    jax.block_until_ready(y_big)
    ref_big = mlp_reference(x_big, params)
    assert y_big.shape == (1000,)
    assert jnp.allclose(y_big, ref_big, atol=1e-5, rtol=1e-5)

    # Hidden size not a multiple of 8: exercises the sublane-granule padding path.
    params_pad = init_params(k_params2, hidden_size=20)
    prepped_pad = prepare_params(params_pad)
    y_pad = simple_mlp_forward(x, prepped_pad)
    jax.block_until_ready(y_pad)
    assert jnp.allclose(y_pad, mlp_reference(x, params_pad), atol=1e-5, rtol=1e-5)

    # Optional bf16-tanh fast path (intended for v6e/v7x; keep off on v5e).
    y_bf16 = simple_mlp_forward(x_big, prepped, bf16_tanh=True)
    jax.block_until_ready(y_bf16)
    assert jnp.allclose(y_bf16, ref_big, atol=5e-2, rtol=5e-2)

    print("KERNEL_OK")
</pallas_src>

<mosaic_0001>
module attributes {stable_mosaic.version = 11 : i64} {
  func.func @_mlp_kernel(%arg0: i32, %arg1: memref<2x128xf32, #tpu.memory_space<vmem>>, %arg2: memref<32x2xf32, #tpu.memory_space<vmem>>, %arg3: memref<32x1xf32, #tpu.memory_space<vmem>>, %arg4: memref<32x32xf32, #tpu.memory_space<vmem>>, %arg5: memref<32x1xf32, #tpu.memory_space<vmem>>, %arg6: memref<32x1xf32, #tpu.memory_space<vmem>>, %arg7: memref<1x1xf32, #tpu.memory_space<vmem>>, %arg8: memref<1x128xf32, #tpu.memory_space<vmem>>) attributes {dimension_semantics = [#tpu.dimension_semantics<parallel>], iteration_bounds = array<i64: 1>, scalar_prefetch = 0 : i64, scratch_operands = 0 : i64, tpu.core_type = #tpu.core_type<tc>, window_params = [{transform_indices = @transform_0, window_bounds = array<i64: 2, 128>}, {pipeline_mode = #tpu.pipeline_mode<synchronous>, transform_indices = @transform_1, window_bounds = array<i64: 32, 2>}, {pipeline_mode = #tpu.pipeline_mode<synchronous>, transform_indices = @transform_2, window_bounds = array<i64: 32, 1>}, {pipeline_mode = #tpu.pipeline_mode<synchronous>, transform_indices = @transform_3, window_bounds = array<i64: 32, 32>}, {pipeline_mode = #tpu.pipeline_mode<synchronous>, transform_indices = @transform_4, window_bounds = array<i64: 32, 1>}, {pipeline_mode = #tpu.pipeline_mode<synchronous>, transform_indices = @transform_5, window_bounds = array<i64: 32, 1>}, {pipeline_mode = #tpu.pipeline_mode<synchronous>, transform_indices = @transform_6, window_bounds = array<i64: 1, 1>}, {transform_indices = @transform_7, window_bounds = array<i64: 1, 128>}]} {
    %c0 = arith.constant 0 : index
    %c0_0 = arith.constant 0 : index
    %0 = vector.load %arg1[%c0, %c0_0] : memref<2x128xf32, #tpu.memory_space<vmem>>, vector<2x128xf32>
    %c0_1 = arith.constant 0 : index
    %c0_2 = arith.constant 0 : index
    %1 = vector.load %arg2[%c0_1, %c0_2] : memref<32x2xf32, #tpu.memory_space<vmem>>, vector<32x2xf32>
    %2 = vector.extract_strided_slice %1 {offsets = [0, 0], sizes = [32, 1], strides = [1, 1]} : vector<32x2xf32> to vector<32x1xf32>
    %3 = vector.extract_strided_slice %0 {offsets = [0, 0], sizes = [1, 128], strides = [1, 1]} : vector<2x128xf32> to vector<1x128xf32>
    %4 = vector.broadcast %2 : vector<32x1xf32> to vector<32x128xf32>
    %5 = vector.broadcast %3 : vector<1x128xf32> to vector<32x128xf32>
    %6 = arith.mulf %4, %5 : vector<32x128xf32>
    %7 = vector.extract_strided_slice %1 {offsets = [0, 1], sizes = [32, 1], strides = [1, 1]} : vector<32x2xf32> to vector<32x1xf32>
    %8 = vector.extract_strided_slice %0 {offsets = [1, 0], sizes = [1, 128], strides = [1, 1]} : vector<2x128xf32> to vector<1x128xf32>
    %9 = vector.broadcast %7 : vector<32x1xf32> to vector<32x128xf32>
    %10 = vector.broadcast %8 : vector<1x128xf32> to vector<32x128xf32>
    %11 = arith.mulf %9, %10 : vector<32x128xf32>
    %12 = arith.addf %6, %11 : vector<32x128xf32>
    %c0_3 = arith.constant 0 : index
    %c0_4 = arith.constant 0 : index
    %13 = vector.load %arg3[%c0_3, %c0_4] : memref<32x1xf32, #tpu.memory_space<vmem>>, vector<32x1xf32>
    %14 = vector.broadcast %13 : vector<32x1xf32> to vector<32x128xf32>
    %15 = arith.addf %12, %14 : vector<32x128xf32>
    %16 = math.tanh %15 : vector<32x128xf32>
    %c0_5 = arith.constant 0 : index
    %c0_6 = arith.constant 0 : index
    %17 = vector.load %arg4[%c0_5, %c0_6] : memref<32x32xf32, #tpu.memory_space<vmem>>, vector<32x32xf32>
    %cst = arith.constant dense<0.000000e+00> : vector<32x128xf32>
    %18 = tpu.matmul %17, %16, %cst {dimension_numbers = #tpu.dot_dimension_numbers<[1], [0], [0], [1], [0, 0, 1, 1], [], []>} : vector<32x32xf32>, vector<32x128xf32>, vector<32x128xf32> -> vector<32x128xf32>
    %c0_7 = arith.constant 0 : index
    %c0_8 = arith.constant 0 : index
    %19 = vector.load %arg5[%c0_7, %c0_8] : memref<32x1xf32, #tpu.memory_space<vmem>>, vector<32x1xf32>
    %20 = vector.broadcast %19 : vector<32x1xf32> to vector<32x128xf32>
    %21 = arith.addf %18, %20 : vector<32x128xf32>
    %22 = math.tanh %21 : vector<32x128xf32>
    %c0_9 = arith.constant 0 : index
    %c0_10 = arith.constant 0 : index
    %23 = vector.load %arg6[%c0_9, %c0_10] : memref<32x1xf32, #tpu.memory_space<vmem>>, vector<32x1xf32>
    %24 = vector.broadcast %23 : vector<32x1xf32> to vector<32x128xf32>
    %25 = arith.mulf %24, %22 : vector<32x128xf32>
    %cst_11 = arith.constant dense<0.000000e+00> : vector<128xf32>
    %26 = vector.multi_reduction <add>, %25, %cst_11 [0] : vector<32x128xf32> to vector<128xf32>
    %27 = vector.shape_cast %26 : vector<128xf32> to vector<1x128xf32>
    %c0_12 = arith.constant 0 : index
    %c0_13 = arith.constant 0 : index
    %28 = vector.load %arg7[%c0_12, %c0_13] : memref<1x1xf32, #tpu.memory_space<vmem>>, vector<1x1xf32>
    %29 = vector.broadcast %28 : vector<1x1xf32> to vector<1x128xf32>
    %30 = arith.addf %27, %29 : vector<1x128xf32>
    %c0_14 = arith.constant 0 : index
    %c0_15 = arith.constant 0 : index
    %31 = vector.load %arg8[%c0_14, %c0_15] : memref<1x128xf32, #tpu.memory_space<vmem>>, vector<1x128xf32>
    tpu.vector_store %arg8[%c0_14, %c0_15], %30 {strides = array<i32>} : memref<1x128xf32, #tpu.memory_space<vmem>>, vector<1x128xf32>,
    return
  }
  func.func @transform_0(%arg0: i32) -> (i32, i32) {
    %c0_i32 = arith.constant 0 : i32
    %c0_i32_0 = arith.constant 0 : i32
    return %c0_i32, %arg0 : i32, i32
  }
  func.func @transform_1(%arg0: i32) -> (i32, i32) {
    %c0_i32 = arith.constant 0 : i32
    %c0_i32_0 = arith.constant 0 : i32
    %c0_i32_1 = arith.constant 0 : i32
    return %c0_i32, %c0_i32_0 : i32, i32
  }
  func.func @transform_2(%arg0: i32) -> (i32, i32) {
    %c0_i32 = arith.constant 0 : i32
    %c0_i32_0 = arith.constant 0 : i32
    %c0_i32_1 = arith.constant 0 : i32
    return %c0_i32, %c0_i32_0 : i32, i32
  }
  func.func @transform_3(%arg0: i32) -> (i32, i32) {
    %c0_i32 = arith.constant 0 : i32
    %c0_i32_0 = arith.constant 0 : i32
    %c0_i32_1 = arith.constant 0 : i32
    return %c0_i32, %c0_i32_0 : i32, i32
  }
  func.func @transform_4(%arg0: i32) -> (i32, i32) {
    %c0_i32 = arith.constant 0 : i32
    %c0_i32_0 = arith.constant 0 : i32
    %c0_i32_1 = arith.constant 0 : i32
    return %c0_i32, %c0_i32_0 : i32, i32
  }
  func.func @transform_5(%arg0: i32) -> (i32, i32) {
    %c0_i32 = arith.constant 0 : i32
    %c0_i32_0 = arith.constant 0 : i32
    %c0_i32_1 = arith.constant 0 : i32
    return %c0_i32, %c0_i32_0 : i32, i32
  }
  func.func @transform_6(%arg0: i32) -> (i32, i32) {
    %c0_i32 = arith.constant 0 : i32
    %c0_i32_0 = arith.constant 0 : i32
    %c0_i32_1 = arith.constant 0 : i32
    return %c0_i32, %c0_i32_0 : i32, i32
  }
  func.func @transform_7(%arg0: i32) -> (i32, i32) {
    %c0_i32 = arith.constant 0 : i32
    %c0_i32_0 = arith.constant 0 : i32
    return %c0_i32, %arg0 : i32, i32
  }
}

</mosaic_0001>

<bundles_post_ra>
// kernel: simple_mlp_forward.1
= control target key start
LH: loop header
LB: loop body
LE: loop exit
PB: predicated region body
PF: predicated region fallthrough
CT: control target
= control target key end

     0   :  { %v282_v0 = vmov 0   ;;  %v283_v4 = vmov 1   ;;  %vm143_vm0 = vcmask 261120   ;;  %s393_s1 = inlined_call_operand.vmem [shape: f32[32,2], index: 1, kind: input, shape index: {}]   ;;  %s394_s2 = inlined_call_operand.vmem [shape: f32[32,1], index: 2, kind: input, shape index: {}]   ;;  %s395_s6 = inlined_call_operand.<no memory space> [shape: f32[1,1], index: 6, kind: input, shape index: {}]   ;;  %s396_s4 = inlined_call_operand.vmem [shape: f32[32,1], index: 4, kind: input, shape index: {}]   ;;  %s397_s5 = inlined_call_operand.vmem [shape: f32[32,1], index: 5, kind: input, shape index: {}]   ;;  %s398_s0 = inlined_call_operand.vmem [shape: f32[2,128], index: 0, kind: input, shape index: {}]   ;;  %s399_s3 = inlined_call_operand.vmem [shape: f32[32,32], index: 3, kind: input, shape index: {}]   ;;  %s400_s7 = inlined_call_operand.vmem [shape: f32[1,128], index: 7, kind: output, shape index: {}]  }
   0x1   :  { %261 = vset.pattern.permute.xlu2 %v282_v0  ;;  %259 = vset.pattern.permute.xlu1 %v282_v0  ;;  %v32_v1 = vld [vmem:[%s393_s1 + $0x18] sm:$0xff]  ;;  %v31_v2 = vld [vmem:[%s393_s1 + $0x10] sm:$0xff]  ;;  %v30_v3 = vld [vmem:[%s393_s1 + $0x8] sm:$0xff]  ;;  %v12_v7 = vstv %s395_s6 }
   0x2   :  { %257 = vset.pattern.permute.xlu0 %v282_v0  ;;  %45 = vperm.xlu1 %259, %v31_v2   ;;  %v29_v5 = vld [vmem:[%s393_s1] sm:$0xff]  ;;  %v86_v6 = vld [vmem:[%s394_s2 + $0x18] sm:$0xff]  ;;  %13 = vst [vmem:[#allocation2] sm:$0x1] %v12_v7  ;;  %v85_v8 = vld [vmem:[%s394_s2 + $0x10] sm:$0xff] }
   0x3   :  { %50 = vperm.xlu0 %257, %v32_v1   ;;  %40 = vperm.xlu2 %261, %v30_v3   ;;  %v83_v9 = vld [vmem:[%s394_s2] sm:$0xff]  ;;  %v84_v10 = vld [vmem:[%s394_s2 + $0x8] sm:$0xff]  ;;  %v121_v14 = vld [vmem:[%s396_s4 + $0x10] sm:$0xff] }
   0x4   :  { %v119_v11 = vld [vmem:[%s396_s4] sm:$0xff]  ;;  %v120_v13 = vld [vmem:[%s396_s4 + $0x8] sm:$0xff]  ;;  %v192_v15 = vld [vmem:[%s397_s5 + $0x18] sm:$0xff] }
   0x5   :  { %v189_v12 = vld [vmem:[%s397_s5] sm:$0xff]  ;;  %v122_v16 = vld [vmem:[%s396_s4 + $0x18] sm:$0xff]  ;;  %v190_v17 = vld [vmem:[%s397_s5 + $0x8] sm:$0xff] }
   0x6   :  { %v191_v18 = vld [vmem:[%s397_s5 + $0x10] sm:$0xff]  ;;  %v28_v26 = vld [vmem:[%s398_s0] sm:$0x3]  ;;  %v116_v56 = vld [vmem:[%s399_s3 + $0x8] sm:$0xff] }
   0x7   :  { %v74_v27 = vperm.slane %v28_v26, 1  ;;  %v53_v28 = vperm.slane %v28_v26, 0  ;;  %v115_v55 = vld [vmem:[%s399_s3] sm:$0xff]  ;;  %v117_v57 = vld [vmem:[%s399_s3 + $0x10] sm:$0xff]  ;;  %v118_v58 = vld [vmem:[%s399_s3 + $0x18] sm:$0xff] }
   0x9   :  { %v226_v19 = vld [vmem:[#allocation2] sm:$0x1] }
   0xa   :  { %260 = vset.pattern.permute.xlu1 %v283_v4 }
   0xb   :  { %258 = vset.pattern.permute.xlu0 %v283_v4  ;;  %262 = vset.pattern.permute.xlu2 %v283_v4 }
   0xc   :  { %71 = vperm.xlu0 %258, %v32_v1   ;;  %67 = vperm.xlu1 %260, %v31_v2  }
   0xd   :  { %63 = vperm.xlu2 %262, %v30_v3  }
  0x14   :  { %263 = vset.pattern.permute.xlu1 %v282_v0  ;;  %59 = vperm.xlu0 %258, %v29_v5  }
  0x15   :  { %264 = vset.pattern.permute.xlu2 %v282_v0  ;;  %104 = vperm.xlu1 %263, %v86_v6  }
  0x16   :  { %35 = vperm.xlu2 %264, %v29_v5  }
  0x1c   :  { %265 = vset.pattern.permute.xlu0 %v282_v0 }
  0x1d   :  { %99 = vperm.xlu1 %263, %v85_v8   ;;  %89 = vperm.xlu0 %265, %v83_v9  }
  0x1e   :  { %94 = vperm.xlu2 %264, %v84_v10  }
  0x25   :  { %125 = vperm.xlu1 %263, %v119_v11   ;;  %195 = vperm.xlu0 %265, %v189_v12  }
  0x26   :  { %130 = vperm.xlu2 %264, %v120_v13  }
  0x2d   :  { %135 = vperm.xlu1 %263, %v121_v14   ;;  %210 = vperm.xlu0 %265, %v192_v15  }
  0x2e   :  { %140 = vperm.xlu2 %264, %v122_v16  }
  0x35   :  { %200 = vperm.xlu1 %263, %v190_v17  }
  0x36   :  { %205 = vperm.xlu2 %264, %v191_v18  }
  0x3d   :  { %229 = vperm.xlu1 %263, %v226_v19  }
  0x5d   :  { %v41_v20 = vpop.permute.xlu2 %40 }
  0x5e   :  { %v55_v35 = vmul.f32 %v53_v28, %v41_v20 }
  0x67   :  { %v64_v23 = vpop.permute.xlu2 %63 }
  0x68   :  { %v76_v36 = vmul.f32 %v74_v27, %v64_v23 }
  0x6a   :  { %v80_v41 = vadd.f32 %v76_v36, %v55_v35 }
  0x70   :  { %v36_v30 = vpop.permute.xlu2 %35 }
  0x71   :  { %v54_v39 = vmul.f32 %v53_v28, %v36_v30 }
  0x74   :  { %v46_v21 = vpop.permute.xlu1 %45 }
  0x75   :  { %v51_v22 = vpop.permute.xlu0 %50  ;;  %v56_v40 = vmul.f32 %v53_v28, %v46_v21 }
  0x76   :  { %v57_v31 = vmul.f32 %v53_v28, %v51_v22 }
  0x78   :  { %v95_v43 = vpop.permute.xlu2 %94 }
  0x79   :  { %v108_v48 = vadd.f32 %v95_v43, %v80_v41 }
  0x7e   :  { %v72_v24 = vpop.permute.xlu0 %71  ;;  %v68_v25 = vpop.permute.xlu1 %67 }
  0x7f   :  { %v78_v29 = vmul.f32 %v74_v27, %v72_v24  ;;  %v77_v38 = vmul.f32 %v74_v27, %v68_v25 }
  0x80   :  { %v131_v60 = vpop.permute.xlu2 %130 }
  0x81   :  { %v82_v33 = vadd.f32 %v78_v29, %v57_v31  ;;  %v81_v44 = vadd.f32 %v77_v38, %v56_v40 }
  0x86   :  { %v60_v32 = vpop.permute.xlu0 %59 }
  0x87   :  { %v105_v34 = vpop.permute.xlu1 %104  ;;  %v75_v42 = vmul.f32 %v74_v27, %v60_v32 }
  0x88   :  { %v110_v37 = vadd.f32 %v105_v34, %v82_v33  ;;  %v141_v2 = vpop.permute.xlu2 %140 }
  0x89   :  { %v79_v50 = vadd.f32 %v75_v42, %v54_v39 }
  0x8a   :  { %266 = vtanh.f32 %v110_v37 }
  0x8f   :  { %v100_v45 = vpop.permute.xlu1 %99  ;;  %v90_v46 = vpop.permute.xlu0 %89 }
  0x90   :  { %v267_v47 = vpop.eup %266  ;;  %v109_v49 = vadd.f32 %v100_v45, %v81_v44  ;;  %v107_v51 = vadd.f32 %v90_v46, %v79_v50  ;;  %v206_v14 = vpop.permute.xlu2 %205 }
  0x91   :  { %168 = vmatpush.msra.mxu0 %v267_v47  ;;  %243 = vmatpush.msra.mxu1 %v267_v47 }
  0x92   :  { %268 = vtanh.f32 %v109_v49  ;;  %244 = vmatpush.msra.mxu2 %v267_v47  ;;  %245 = vmatpush.msra.mxu3 %v267_v47 }
  0x93   :  { %270 = vtanh.f32 %v108_v48 }
  0x94   :  { %272 = vtanh.f32 %v107_v51 }
  0x97   :  { %v126_v59 = vpop.permute.xlu1 %125  ;;  %v196_v5 = vpop.permute.xlu0 %195 }
  0x98   :  { %v269_v52 = vpop.eup %268 }
  0x99   :  { %169 = vmatpush.msra.mxu0 %v269_v52  ;;  %246 = vmatpush.msra.mxu1 %v269_v52  ;;  %v271_v53 = vpop.eup %270 }
  0x9a   :  { %247 = vmatpush.msra.mxu2 %v269_v52  ;;  %248 = vmatpush.msra.mxu3 %v269_v52  ;;  %v273_v54 = vpop.eup %272 }
  0x9b   :  { %170 = vmatpush.msra.mxu0 %v271_v53  ;;  %249 = vmatpush.msra.mxu1 %v271_v53 }
  0x9c   :  { %250 = vmatpush.msra.mxu2 %v271_v53  ;;  %251 = vmatpush.msra.mxu3 %v271_v53 }
  0x9d   :  { %171 = vmatpush.msra.mxu0 %v273_v54  ;;  %252 = vmatpush.msra.mxu1 %v273_v54 }
  0x9e   :  { %253 = vmatpush.msra.mxu2 %v273_v54  ;;  %254 = vmatpush.msra.mxu3 %v273_v54 }
  0x9f   :  { %239 = vmatmul.msk.f32.vlgmr.msra.gmra.mxu0 %vm143_vm0, %v115_v55  ;;  %240 = vmatmul.msk.f32.vlgmr.msra.gmra.mxu1 %vm143_vm0, %v116_v56  ;;  %v136_v1 = vpop.permute.xlu1 %135  ;;  %v211_v18 = vpop.permute.xlu0 %210 }
  0xa0   :  { %241 = vmatmul.msk.f32.vlgmr.msra.gmra.mxu2 %vm143_vm0, %v117_v57  ;;  %242 = vmatmul.msk.f32.vlgmr.msra.gmra.mxu3 %vm143_vm0, %v118_v58 }
  0xa7   :  { %v201_v10 = vpop.permute.xlu1 %200 }
  0xaf   :  { %v230_v26 = vpop.permute.xlu1 %229 }
  0xb0   :  { %v232_v28 = vperm.slane %v230_v26, 0 }
 0x11c   :  { %v173_v61 = vpop.f32.mrf.mxu0  ;;  %v176_v62 = vpop.f32.mrf.mxu1 }
 0x11d   :  { %v174_v63 = vadd.f32 %v173_v61, %v126_v59  ;;  %v177_v0 = vadd.f32 %v176_v62, %v131_v60 }
 0x11f   :  { %274 = vtanh.f32 %v174_v63 }
 0x120   :  { %276 = vtanh.f32 %v177_v0 }
 0x123   :  { %v179_v3 = vpop.f32.mrf.mxu2  ;;  %v182_v4 = vpop.f32.mrf.mxu3 }
 0x124   :  { %v180_v6 = vadd.f32 %v179_v3, %v136_v1  ;;  %v183_v7 = vadd.f32 %v182_v4, %v141_v2 }
 0x125   :  { %v275_v8 = vpop.eup %274 }
 0x126   :  { %v277_v9 = vpop.eup %276  ;;  %278 = vtanh.f32 %v180_v6  ;;  %v213_v11 = vmul.f32 %v275_v8, %v196_v5 }
 0x127   :  { %280 = vtanh.f32 %v183_v7  ;;  %v214_v12 = vmul.f32 %v277_v9, %v201_v10 }
 0x129   :  { %v217_v16 = vadd.f32 %v214_v12, %v213_v11 }
 0x12c   :  { %v279_v13 = vpop.eup %278 }
 0x12d   :  { %v281_v15 = vpop.eup %280  ;;  %v215_v17 = vmul.f32 %v279_v13, %v206_v14 }
 0x12e   :  { %v216_v20 = vmul.f32 %v281_v15, %v211_v18 }
 0x12f   :  { %v218_v19 = vadd.f32 %v217_v16, %v215_v17 }
 0x131   :  { %v219_v21 = vadd.f32 %v218_v19, %v216_v20 }
 0x133   :  { %v220_v22 = vrot.slane %v219_v21, 4 }
 0x135   :  { %v221_v23 = vadd.f32 %v220_v22, %v219_v21 }
 0x137   :  { %v222_v24 = vrot.slane %v221_v23, 2 }
 0x139   :  { %v223_v25 = vadd.f32 %v222_v24, %v221_v23 }
 0x13b   :  { %v224_v27 = vrot.slane %v223_v25, 1 }
 0x13d   :  { %v225_v29 = vadd.f32 %v224_v27, %v223_v25 }
 0x13f   :  { %v233_v30 = vadd.f32 %v232_v28, %v225_v29 }
 0x141   :  { %234 = vst [vmem:[%s400_s7] sm:$0x1] %v233_v30 }

</bundles_post_ra>
